<compile_context>
chip_gen: v6e
topology: v6e:2x2x1
jax: 0.10.0
libtpu: 0.0.40
codegen_flags: <defaults>
</compile_context>

<pallas_src>
import functools

import jax
import jax.numpy as jnp
from jax.experimental import pallas as pl
from jax.experimental.pallas import tpu as pltpu

_LANE = 128            # padded output width (lane-dense stores)
_MAX_TM = 512          # row-tile cap; multiple of 256, sized for v7x VMEM
_SQRT_2_OVER_PI = 0.7978845608028654


def _order_agnostic_kernel(x1_ref, x2_ref, w1a_ref, w1b_ref, b1_ref,
                           w2_ref, b2_ref, o_ref):
    # x1_ref, x2_ref : (TM, H)       first-token rows of each pair
    # w1a_ref        : (H, 2H)       linear1 weight rows hitting |x1 - x2|
    # w1b_ref        : (H, 2H)       linear1 weight rows hitting x1 * x2
    # b1_ref         : (1, 2H)
    # w2_ref         : (2H, 128)     linear2 weight, zero-padded to 128 cols
    # b2_ref         : (1, 128)
    # o_ref          : (TM, 128)     padded logits; column 0 is the real output
    mxu_dtype = w1a_ref.dtype

    x1 = x1_ref[...].astype(jnp.float32)
    x2 = x2_ref[...].astype(jnp.float32)
    abs_diff = jnp.abs(x1 - x2)
    prod = x1 * x2

    # linear1 on the (virtually) concatenated features: two MXU matmuls.
    h = jnp.dot(abs_diff.astype(mxu_dtype), w1a_ref[...],
                preferred_element_type=jnp.float32)
    h = h + jnp.dot(prod.astype(mxu_dtype), w1b_ref[...],
                    preferred_element_type=jnp.float32)
    h = h + b1_ref[...].astype(jnp.float32)

    # GELU in f32 on the VPU/EUP.
    # TODO(synk): PyTorch nn.GELU() default is the exact erf form; the tanh
    # approximation used here differs by <~1e-3.
    h = 0.5 * h * (1.0 + jnp.tanh(_SQRT_2_OVER_PI * (h + 0.044715 * h * h * h)))

    # TODO(synk): nn.Dropout(p=0.1) is identity in eval mode; training-mode
    # RNG masking not implemented.

    # linear2 into the 128-wide padded output (lane-dense store).
    y = jnp.dot(h.astype(mxu_dtype), w2_ref[...],
                preferred_element_type=jnp.float32)
    y = y + b2_ref[...].astype(jnp.float32)
    o_ref[...] = y.astype(o_ref.dtype)


@functools.partial(jax.jit, static_argnames=("mxu_dtype", "tm"))
def order_agnostic_classifier(x1, x2, w1, b1, w2, b2,
                              x1_seq=None, x2_seq=None,
                              *, mxu_dtype=jnp.bfloat16, tm=None):
    """Forward pass of OrderAgnosticClassifier.

    x1, x2 : (B, S, H) float32
    w1     : (2H, 2H)  linear1.weight (PyTorch [out, in] layout)
    b1     : (2H,)     linear1.bias
    w2     : (1, 2H)   linear2.weight
    b2     : (1,)      linear2.bias
    x1_seq, x2_seq     unused (kept for signature parity with the module)
    returns: (B,) float32
    """
    del x1_seq, x2_seq  # unused by the PyTorch forward
    B, _, H = x1.shape
    H2 = 2 * H

    # First token of each sequence.
    x1f = x1[:, 0, :]
    x2f = x2[:, 0, :]

    # (in, out) layout; split linear1 rows so the kernel avoids a lane concat.
    w1_io = jnp.transpose(w1).astype(mxu_dtype)          # (2H, 2H)
    w1a = w1_io[:H, :]                                   # multiplies |x1 - x2|
    w1b = w1_io[H:, :]                                   # multiplies x1 * x2
    b1_row = b1.reshape(1, H2).astype(jnp.float32)

    # Zero-pad the single output class to a lane-dense width of 128.
    w2_io = jnp.transpose(w2).astype(mxu_dtype)          # (2H, 1)
    w2_pad = jnp.zeros((H2, _LANE), mxu_dtype).at[:, :1].set(w2_io)
    b2_pad = jnp.zeros((1, _LANE), jnp.float32).at[:, :1].set(
        b2.reshape(1, 1).astype(jnp.float32))

    # Row tile: full batch if small, else a 512-row tile.
    if tm is None:
        tm = B if B <= _MAX_TM else _MAX_TM
    grid = (pl.cdiv(B, tm),)

    row_spec = lambda shape: pl.BlockSpec(shape, lambda i: (i, 0))
    resident = lambda shape: pl.BlockSpec(shape, lambda i: (0, 0))

    out_pad = pl.pallas_call(
        _order_agnostic_kernel,
        out_shape=jax.ShapeDtypeStruct((B, _LANE), jnp.float32),
        grid=grid,
        in_specs=[
            row_spec((tm, H)),        # x1 rows (streamed / double-buffered)
            row_spec((tm, H)),        # x2 rows
            resident((H, H2)),        # w1a (stays resident in VMEM)
            resident((H, H2)),        # w1b
            resident((1, H2)),        # b1
            resident((H2, _LANE)),    # w2 (padded)
            resident((1, _LANE)),     # b2 (padded)
        ],
        out_specs=row_spec((tm, _LANE)),
        compiler_params=pltpu.CompilerParams(
            dimension_semantics=("parallel",),
            vmem_limit_bytes=48 * 1024 * 1024,
        ),
    )(x1f, x2f, w1a, w1b, b1_row, w2_pad, b2_pad)

    return out_pad[:, 0]


def init_params(key, hidden):
    """PyTorch-style default init for Linear(2H, 2H) and Linear(2H, 1)."""
    h2 = 2 * hidden
    k1, k2, k3, k4 = jax.random.split(key, 4)
    bound = 1.0 / (h2 ** 0.5)
    w1 = jax.random.uniform(k1, (h2, h2), jnp.float32, -bound, bound)
    b1 = jax.random.uniform(k2, (h2,), jnp.float32, -bound, bound)
    w2 = jax.random.uniform(k3, (1, h2), jnp.float32, -bound, bound)
    b2 = jax.random.uniform(k4, (1,), jnp.float32, -bound, bound)
    return w1, b1, w2, b2


if __name__ == "__main__":
    B, S, H = 16, 4, 32
    key = jax.random.PRNGKey(0)
    kx1, kx2, kp = jax.random.split(key, 3)
    x1 = jax.random.normal(kx1, (B, S, H), jnp.float32)
    x2 = jax.random.normal(kx2, (B, S, H), jnp.float32)
    w1, b1, w2, b2 = init_params(kp, H)

    # tm=8 exercises a multi-step grid (streamed rows, resident weights).
    out = order_agnostic_classifier(x1, x2, w1, b1, w2, b2, tm=8)
    out = jax.block_until_ready(out)

    # Reference in plain JAX with matching numerics (bf16 MXU operands,
    # f32 accumulation, tanh GELU, eval-mode dropout).
    x1f = x1[:, 0, :]
    x2f = x2[:, 0, :]
    v = jnp.concatenate([jnp.abs(x1f - x2f), x1f * x2f], axis=1)
    h = jnp.dot(v.astype(jnp.bfloat16), w1.T.astype(jnp.bfloat16),
                preferred_element_type=jnp.float32) + b1
    h = 0.5 * h * (1.0 + jnp.tanh(_SQRT_2_OVER_PI * (h + 0.044715 * h ** 3)))
    ref = (jnp.dot(h.astype(jnp.bfloat16), w2.T.astype(jnp.bfloat16),
                   preferred_element_type=jnp.float32) + b2).reshape(-1)

    assert out.shape == (B,), out.shape
    max_err = float(jnp.max(jnp.abs(out - ref)))
    assert jnp.allclose(out, ref, atol=5e-2, rtol=5e-2), max_err

    print("KERNEL_OK")
</pallas_src>

<mosaic_0001>
module attributes {stable_mosaic.version = 11 : i64} {
  func.func @_order_agnostic_kernel(%arg0: i32, %arg1: memref<8x32xf32, #tpu.memory_space<vmem>>, %arg2: memref<8x32xf32, #tpu.memory_space<vmem>>, %arg3: memref<32x64xbf16, #tpu.memory_space<vmem>>, %arg4: memref<32x64xbf16, #tpu.memory_space<vmem>>, %arg5: memref<1x64xf32, #tpu.memory_space<vmem>>, %arg6: memref<64x128xbf16, #tpu.memory_space<vmem>>, %arg7: memref<1x128xf32, #tpu.memory_space<vmem>>, %arg8: memref<8x128xf32, #tpu.memory_space<vmem>>) attributes {dimension_semantics = [#tpu.dimension_semantics<parallel>], iteration_bounds = array<i64: 2>, scalar_prefetch = 0 : i64, scratch_operands = 0 : i64, tpu.core_type = #tpu.core_type<tc>, window_params = [{transform_indices = @transform_0, window_bounds = array<i64: 8, 32>}, {transform_indices = @transform_1, window_bounds = array<i64: 8, 32>}, {pipeline_mode = #tpu.pipeline_mode<synchronous>, transform_indices = @transform_2, window_bounds = array<i64: 32, 64>}, {pipeline_mode = #tpu.pipeline_mode<synchronous>, transform_indices = @transform_3, window_bounds = array<i64: 32, 64>}, {pipeline_mode = #tpu.pipeline_mode<synchronous>, transform_indices = @transform_4, window_bounds = array<i64: 1, 64>}, {pipeline_mode = #tpu.pipeline_mode<synchronous>, transform_indices = @transform_5, window_bounds = array<i64: 64, 128>}, {pipeline_mode = #tpu.pipeline_mode<synchronous>, transform_indices = @transform_6, window_bounds = array<i64: 1, 128>}, {transform_indices = @transform_7, window_bounds = array<i64: 8, 128>}]} {
    %c0 = arith.constant 0 : index
    %c0_0 = arith.constant 0 : index
    %0 = vector.load %arg1[%c0, %c0_0] : memref<8x32xf32, #tpu.memory_space<vmem>>, vector<8x32xf32>
    %c0_1 = arith.constant 0 : index
    %c0_2 = arith.constant 0 : index
    %1 = vector.load %arg2[%c0_1, %c0_2] : memref<8x32xf32, #tpu.memory_space<vmem>>, vector<8x32xf32>
    %2 = arith.subf %0, %1 : vector<8x32xf32>
    %3 = math.absf %2 : vector<8x32xf32>
    %4 = arith.mulf %0, %1 : vector<8x32xf32>
    %5 = arith.truncf %3 : vector<8x32xf32> to vector<8x32xbf16>
    %c0_3 = arith.constant 0 : index
    %c0_4 = arith.constant 0 : index
    %6 = vector.load %arg3[%c0_3, %c0_4] : memref<32x64xbf16, #tpu.memory_space<vmem>>, vector<32x64xbf16>
    %cst = arith.constant dense<0.000000e+00> : vector<8x64xf32>
    %7 = tpu.matmul %5, %6, %cst {dimension_numbers = #tpu.dot_dimension_numbers<[1], [0], [0], [1], [0, 0, 1, 1], [], []>} : vector<8x32xbf16>, vector<32x64xbf16>, vector<8x64xf32> -> vector<8x64xf32>
    %8 = arith.truncf %4 : vector<8x32xf32> to vector<8x32xbf16>
    %c0_5 = arith.constant 0 : index
    %c0_6 = arith.constant 0 : index
    %9 = vector.load %arg4[%c0_5, %c0_6] : memref<32x64xbf16, #tpu.memory_space<vmem>>, vector<32x64xbf16>
    %cst_7 = arith.constant dense<0.000000e+00> : vector<8x64xf32>
    %10 = tpu.matmul %8, %9, %cst_7 {dimension_numbers = #tpu.dot_dimension_numbers<[1], [0], [0], [1], [0, 0, 1, 1], [], []>} : vector<8x32xbf16>, vector<32x64xbf16>, vector<8x64xf32> -> vector<8x64xf32>
    %11 = arith.addf %7, %10 : vector<8x64xf32>
    %c0_8 = arith.constant 0 : index
    %c0_9 = arith.constant 0 : index
    %12 = vector.load %arg5[%c0_8, %c0_9] : memref<1x64xf32, #tpu.memory_space<vmem>>, vector<1x64xf32>
    %13 = vector.broadcast %12 : vector<1x64xf32> to vector<8x64xf32>
    %14 = arith.addf %11, %13 : vector<8x64xf32>
    %cst_10 = arith.constant 5.000000e-01 : f32
    %15 = vector.broadcast %cst_10 : f32 to vector<8x64xf32>
    %16 = arith.mulf %15, %14 : vector<8x64xf32>
    %cst_11 = arith.constant 4.471500e-02 : f32
    %17 = vector.broadcast %cst_11 : f32 to vector<8x64xf32>
    %18 = arith.mulf %17, %14 : vector<8x64xf32>
    %19 = arith.mulf %18, %14 : vector<8x64xf32>
    %20 = arith.mulf %19, %14 : vector<8x64xf32>
    %21 = arith.addf %14, %20 : vector<8x64xf32>
    %cst_12 = arith.constant 0.797884583 : f32
    %22 = vector.broadcast %cst_12 : f32 to vector<8x64xf32>
    %23 = arith.mulf %22, %21 : vector<8x64xf32>
    %24 = math.tanh %23 : vector<8x64xf32>
    %cst_13 = arith.constant 1.000000e+00 : f32
    %25 = vector.broadcast %cst_13 : f32 to vector<8x64xf32>
    %26 = arith.addf %25, %24 : vector<8x64xf32>
    %27 = arith.mulf %16, %26 : vector<8x64xf32>
    %28 = arith.truncf %27 : vector<8x64xf32> to vector<8x64xbf16>
    %c0_14 = arith.constant 0 : index
    %c0_15 = arith.constant 0 : index
    %29 = vector.load %arg6[%c0_14, %c0_15] : memref<64x128xbf16, #tpu.memory_space<vmem>>, vector<64x128xbf16>
    %cst_16 = arith.constant dense<0.000000e+00> : vector<8x128xf32>
    %30 = tpu.matmul %28, %29, %cst_16 {dimension_numbers = #tpu.dot_dimension_numbers<[1], [0], [0], [1], [0, 0, 1, 1], [], []>} : vector<8x64xbf16>, vector<64x128xbf16>, vector<8x128xf32> -> vector<8x128xf32>
    %c0_17 = arith.constant 0 : index
    %c0_18 = arith.constant 0 : index
    %31 = vector.load %arg7[%c0_17, %c0_18] : memref<1x128xf32, #tpu.memory_space<vmem>>, vector<1x128xf32>
    %32 = vector.broadcast %31 : vector<1x128xf32> to vector<8x128xf32>
    %33 = arith.addf %30, %32 : vector<8x128xf32>
    %c0_19 = arith.constant 0 : index
    %c0_20 = arith.constant 0 : index
    %34 = vector.load %arg8[%c0_19, %c0_20] : memref<8x128xf32, #tpu.memory_space<vmem>>, vector<8x128xf32>
    tpu.vector_store %arg8[%c0_19, %c0_20], %33 {strides = array<i32>} : memref<8x128xf32, #tpu.memory_space<vmem>>, vector<8x128xf32>,
    return
  }
  func.func @transform_0(%arg0: i32) -> (i32, i32) {
    %c0_i32 = arith.constant 0 : i32
    %c0_i32_0 = arith.constant 0 : i32
    return %arg0, %c0_i32 : i32, i32
  }
  func.func @transform_1(%arg0: i32) -> (i32, i32) {
    %c0_i32 = arith.constant 0 : i32
    %c0_i32_0 = arith.constant 0 : i32
    return %arg0, %c0_i32 : i32, i32
  }
  func.func @transform_2(%arg0: i32) -> (i32, i32) {
    %c0_i32 = arith.constant 0 : i32
    %c0_i32_0 = arith.constant 0 : i32
    %c0_i32_1 = arith.constant 0 : i32
    return %c0_i32, %c0_i32_0 : i32, i32
  }
  func.func @transform_3(%arg0: i32) -> (i32, i32) {
    %c0_i32 = arith.constant 0 : i32
    %c0_i32_0 = arith.constant 0 : i32
    %c0_i32_1 = arith.constant 0 : i32
    return %c0_i32, %c0_i32_0 : i32, i32
  }
  func.func @transform_4(%arg0: i32) -> (i32, i32) {
    %c0_i32 = arith.constant 0 : i32
    %c0_i32_0 = arith.constant 0 : i32
    %c0_i32_1 = arith.constant 0 : i32
    return %c0_i32, %c0_i32_0 : i32, i32
  }
  func.func @transform_5(%arg0: i32) -> (i32, i32) {
    %c0_i32 = arith.constant 0 : i32
    %c0_i32_0 = arith.constant 0 : i32
    %c0_i32_1 = arith.constant 0 : i32
    return %c0_i32, %c0_i32_0 : i32, i32
  }
  func.func @transform_6(%arg0: i32) -> (i32, i32) {
    %c0_i32 = arith.constant 0 : i32
    %c0_i32_0 = arith.constant 0 : i32
    %c0_i32_1 = arith.constant 0 : i32
    return %c0_i32, %c0_i32_0 : i32, i32
  }
  func.func @transform_7(%arg0: i32) -> (i32, i32) {
    %c0_i32 = arith.constant 0 : i32
    %c0_i32_0 = arith.constant 0 : i32
    return %arg0, %c0_i32 : i32, i32
  }
}

</mosaic_0001>

<bundles_post_ra>
// kernel: order_agnostic_classifier.1
= control target key start
LH: loop header
LB: loop body
LE: loop exit
PB: predicated region body
PF: predicated region fallthrough
CT: control target
= control target key end

     0   :  { %s717_s24 = smov 0   ;;  %s775_s0 = inlined_call_operand.vmem [shape: f32[16,32], index: 0, kind: input, shape index: {}]   ;;  %s776_s1 = inlined_call_operand.vmem [shape: f32[16,32], index: 1, kind: input, shape index: {}]   ;;  %s777_s2 = inlined_call_operand.vmem [shape: bf16[32,64], index: 2, kind: input, shape index: {}]   ;;  %s778_s3 = inlined_call_operand.vmem [shape: bf16[32,64], index: 3, kind: input, shape index: {}]   ;;  %s779_s4 = inlined_call_operand.vmem [shape: f32[1,64], index: 4, kind: input, shape index: {}]   ;;  %s780_s5 = inlined_call_operand.vmem [shape: bf16[64,128], index: 5, kind: input, shape index: {}]   ;;  %s781_s6 = inlined_call_operand.vmem [shape: f32[1,128], index: 6, kind: input, shape index: {}]   ;;  %s782_s7 = inlined_call_operand.vmem [shape: f32[16,128], index: 7, kind: output, shape index: {}]  }
   0x1 LB: > { %s585_s25 = sadd.s32 4294967295, %s673_s24   ;;  %p589_p0 = scmp.ge.s32.totalorder %s673_s24, 1  ;;  %s673_s24 = sphi %s717_s24, %s17_s24  }
   0x2   : > { %p245_p1 = scmp.lt.s32.totalorder %s673_s24, 3 }
   0x4   : > { %p246_p2 = pnand %p589_p0, %p245_p1 }
   0x5   : > { %p279_p3 = scmp.lt.s32.totalorder (!%p246_p2), %s585_s25, 1 }
   0x6   : > { %249 = sbr.rel (%p246_p2) target bundleno = 454 (0x1c6), region = 48 }
   0xb   : > { %v657_v0 = vld [vmem:[%s778_s3 + $0x8] sm:$0xff]   ;;  %v675_v1 = vmov 0.0   ;;  %v658_v2 = vld [vmem:[%s778_s3] sm:$0xff]   ;;  %vm676_vm0 = vmmov 0   ;;  %s784_s25 = smov (!%p279_p3, %s585_s25), 1  ;;  %vm319_vm1 = vcmask 261120  }
   0xc   : > { %619 = vmatprep.subr.bf16.mxu1 %v675_v1  ;;  %635 = vmatprep.subr.bf16.mxu0 %v675_v1  ;;  %s733_s30 = sshll.u32 %s784_s25, 3  ;;  %v659_v7 = vld [vmem:[%s777_s2 + $0x8] sm:$0xff]   ;;  %v660_v10 = vld [vmem:[%s777_s2] sm:$0xff]   ;;  %v661_v12 = vld [vmem:[%s780_s5 + $0x18] sm:$0xff]   ;;  %vm475_vm2 = vcmask 523264  }
   0xd   : > { %620 = vmatpush3.bf16.msra.mxu1 %v657_v0  ;;  %623 = vmatprep.mubr.msk.bf16.mxu1 %vm676_vm0, %v675_v1  ;;  %s282_s10 = scalar_lea.vmem %s775_s0, %s733_s30  ;;  %s286_s13 = scalar_lea.vmem %s776_s1, %s733_s30  ;;  %v662_v13 = vld [vmem:[%s780_s5 + $0x10] sm:$0xff]   ;;  %v663_v14 = vld [vmem:[%s780_s5 + $0x8] sm:$0xff]   ;;  %v664_v15 = vld [vmem:[%s780_s5] sm:$0xff]  }
   0xe   : > { %621 = vmatprep.subr.bf16.mxu1 %v675_v1  ;;  %643 = vmatprep.mubr.msk.bf16.mxu0 %vm676_vm0, %v675_v1  ;;  %v292_v3 = vld [vmem:[%s282_s10] sm:$0xff]  ;;  %s290_s11 = scalar_lea.vmem %s782_s7, %s733_s30 }
   0xf   : > { %v293_v4 = vld [vmem:[%s286_s13] sm:$0xff]  ;;  %636 = vmatpush3.bf16.msra.mxu0 %v661_v12 }
  0x10   : > { %v294_v5 = vsub.f32 %v292_v3, %v293_v4  ;;  %v296_v6 = vmul.f32 %v293_v4, %v292_v3  ;;  %637 = vmatprep.subr.bf16.mxu0 %v675_v1  ;;  %v599_v21 = vld [vmem:[%s779_s4] ss:$0 sm:$0xff] }
  0x11   : > { %622 = vmatpush3.bf16.msra.mxu1 %v658_v2  ;;  %v600_v37 = vld [vmem:[%s781_s6] ss:$0 sm:$0xff] }
  0x12   : > { %627 = vmatprep.subr.bf16.mxu1 %v675_v1  ;;  %v302_v8 = vpack.c.bf16 %v296_v6, %v296_v6  ;;  %v295_v9 = vand.u32 2147483647, %v294_v5 }
  0x13   : > { %638 = vmatpush3.bf16.msra.mxu0 %v662_v13 }
  0x14   : > { %624 = vmatmul.mubr.msk.bf16.vlgmr.msra.gmra.mxu1 %vm319_vm1, %v302_v8  ;;  %v297_v11 = vpack.c.bf16 %v295_v9, %v295_v9  ;;  %639 = vmatprep.subr.bf16.mxu0 %v675_v1 }
  0x15   : > { %628 = vmatpush3.bf16.msra.mxu1 %v659_v7  ;;  %631 = vmatprep.mubr.msk.bf16.mxu1 %vm676_vm0, %v675_v1 }
  0x16   : > { %629 = vmatprep.subr.bf16.mxu1 %v675_v1 }
  0x17   : > { %640 = vmatpush3.bf16.msra.mxu0 %v663_v14 }
  0x18   : > { %641 = vmatprep.subr.bf16.mxu0 %v675_v1 }
  0x19   : > { %630 = vmatpush3.bf16.msra.mxu1 %v660_v10 }
  0x1b   : > { %642 = vmatpush3.bf16.msra.mxu0 %v664_v15 }
  0x1c   : > { %632 = vmatmul.mubr.msk.bf16.vlgmr.msra.gmra.mxu1 %vm319_vm1, %v297_v11 }
  0xd4   : > { %v357_v16 = vpop.f32.mrf.mxu1 }
  0xd6   : > { %v625_v17 = vpop.f32.mrf.mxu1 }
  0xd8   : > { %v360_v18 = vpop.f32.mrf.mxu1 }
  0xda   : > { %v626_v19 = vpop.f32.mrf.mxu1 }
  0xdc   : > { %v412_v20 = vpop.f32.mrf.mxu1 }
  0xdd   : > { %v413_v22 = vadd.f32 %v412_v20, %v357_v16 }
  0xde   : > { %v633_v23 = vpop.f32.mrf.mxu1 }
  0xdf   : > { %v425_v24 = vadd.f32 %v599_v21, %v413_v22 }
  0xe0   : > { %v415_v25 = vpop.f32.mrf.mxu1 }
  0xe1   : > { %v427_v26 = vmul.f32 0.044715, %v425_v24  ;;  %v426_v33 = vmul.f32 0.5, %v425_v24 }
  0xe2   : > { %v634_v27 = vpop.f32.mrf.mxu1 }
  0xe3   : > { %v428_v28 = vmul.f32 %v427_v26, %v425_v24 }
  0xe5   : > { %v429_v29 = vmul.f32 %v428_v28, %v425_v24 }
  0xe7   : > { %v430_v30 = vadd.f32 %v429_v29, %v425_v24 }
  0xe9   : > { %v431_v31 = vmul.f32 0.7978846, %v430_v30 }
  0xeb   : > { %665 = vtanh.f32 %v431_v31 }
  0xf8   : > { %v666_v32 = vpop.eup %665 }
  0xf9   : > { %v433_v34 = vadd.f32 1.0, %v666_v32 }
  0xfb   : > { %v434_v35 = vmul.f32 %v433_v34, %v426_v33 }
  0xfd   : > { %v435_v36 = vpack.c.bf16 %v434_v35, %v434_v35 }
  0xff   : > { %644 = vmatmul.mubr.msk.bf16.vlgmr.msra.gmra.mxu0 %vm475_vm2, %v435_v36 }
 0x1bf   : > { %v513_v38 = vpop.f32.mrf.mxu0 }
 0x1c0   : > { %v514_v39 = vadd.f32 %v600_v37, %v513_v38 }
 0x1c1   : > { %v645_v40 = vpop.f32.mrf.mxu0 }
 0x1c2   : > { %519 = vst [vmem:[%s290_s11] sm:$0xff] %v514_v39 }
 0x1c3   : > { %v516_v41 = vpop.f32.mrf.mxu0 }
 0x1c5   : > { %v646_v42 = vpop.f32.mrf.mxu0 }
 0x1c6 PF: > { %s17_s24 = sadd.s32 1, %s673_s24  }
 0x1c7   : > { %p14_p4 = scmp.ge.s32.totalorder %s17_s24, 4  }
 0x1c9   :  { %16 = sbr.rel (!%p14_p4) target bundleno = 1 (0x1), region = 81 }

</bundles_post_ra>
